<compile_context>
chip_gen: v7x
topology: tpu7x:2x2x1
jax: 0.10.0
libtpu: 0.0.40
codegen_flags: <defaults>
</compile_context>

<pallas_src>
import jax
import jax.numpy as jnp
from jax.experimental import pallas as pl
from jax.experimental.pallas import tpu as pltpu

IN_DIM = 784
HID_DIM = 128
OUT_DIM = 10
PAD_OUT = 128          # lane-dense fc2 / output width
NEG_BIG = -1e30        # bias on pad columns -> exp() underflows to 0


def _round_up(n, m):
    return ((n + m - 1) // m) * m


def net_kernel(x_ref, w1_ref, b1_ref, w2_ref, b2_ref, o_ref):
    # x tile arrives as f32 straight from the caller's buffer; cast to bf16 in
    # VMEM (hides under the DMA of the next tile).
    x = x_ref[...].astype(jnp.bfloat16)                       # (TM, 784)

    # ---- fc1: pre-dequantized bf16 weights (quantization done in wrapper) --
    h = jnp.dot(x, w1_ref[...],
                preferred_element_type=jnp.float32)           # (TM, 128) f32
    h = h + b1_ref[...]

    # ---- relu ---------------------------------------------------------------
    h = jnp.maximum(h, 0.0)

    # ---- dropout (eval mode -> identity) ------------------------------------

    # ---- fc2: bf16 weights, zero-padded to 128 output columns ---------------
    z = jnp.dot(h.astype(jnp.bfloat16), w2_ref[...],
                preferred_element_type=jnp.float32)           # (TM, 128) f32
    z = z + b2_ref[...]                                       # pad cols -> ~ -1e30

    # ---- log_softmax over dim=1 (pad columns contribute exp() == 0) ---------
    m = jnp.max(z, axis=-1, keepdims=True)
    lse = m + jnp.log(jnp.sum(jnp.exp(z - m), axis=-1, keepdims=True))
    o_ref[...] = (z - lse).astype(o_ref.dtype)                # bf16 writeback


def _fake_quant_to_bf16(w):
    """Symmetric per-tensor int8 fake-quant, scale folded back in -> bf16."""
    amax = jnp.max(jnp.abs(w))
    scale = jnp.where(amax > 0, amax / 127.0, jnp.float32(1.0))
    w_q = jnp.clip(jnp.round(w / scale), -127, 127) * scale
    return w_q.astype(jnp.bfloat16)


def _vmem_limit_bytes(tm):
    # double-buffered x (f32) / out (bf16) tiles + resident bf16 weights
    # (conservatively counted double-buffered) + f32/bf16 intermediates,
    # plus headroom.
    x_tiles = 2 * tm * IN_DIM * 4
    o_tiles = 2 * tm * PAD_OUT * 2
    weights = 2 * (IN_DIM * HID_DIM + HID_DIM * PAD_OUT + 2 * PAD_OUT) * 2
    interm = tm * (HID_DIM * (4 + 2) + PAD_OUT * (4 + 4))
    return int(x_tiles + o_tiles + weights + interm + (8 << 20))


def _pick_tile(B, tm):
    """Batch tile: big enough to amortize per-step overhead, multiple of 256
    for the MXU M-dim, >= 2 grid steps for large batches (v7x megacore), and
    small enough for v7x's 32 MiB scoped VMEM."""
    if B <= 256:
        return _round_up(max(B, 1), 8)
    tm = min(max(tm, 256), 2048)
    tm = max(256, (tm // 256) * 256)
    if B <= tm:
        # keep at least 2 grid steps so both v7x TensorCores get work
        tm = max(256, _round_up(pl.cdiv(B, 2), 256))
    return tm


def net_custom_quant(x, w1, b1, w2, b2, *, tm=1024):
    """Forward pass of NetCustomQuant.

    Weight prep (fake-quant + bf16 dequant + fc2 padding) runs as ordinary XLA
    ops in the wrapper; in a real deployment it would be done once at
    weight-load time and cached — either way it is off the per-forward x path.
    The x stream itself is read exactly once (f32), by the kernel.
    """
    B = x.shape[0]

    # ---- one-time weight prep (hoisted out of the kernel) -------------------
    w1_q = _fake_quant_to_bf16(w1)                                    # (784, 128) bf16
    w2_q = _fake_quant_to_bf16(w2)                                    # (128, 10)  bf16
    w2_q = jnp.pad(w2_q, ((0, 0), (0, PAD_OUT - OUT_DIM)))            # zero pad cols
    b1_p = jnp.reshape(b1, (1, HID_DIM)).astype(jnp.float32)
    b2_p = jnp.pad(jnp.reshape(b2, (1, OUT_DIM)).astype(jnp.float32),
                   ((0, 0), (0, PAD_OUT - OUT_DIM)),
                   constant_values=NEG_BIG)                           # mask pads

    # ---- batch tiling (ragged last block handled by Pallas) -----------------
    tm = _pick_tile(B, tm)
    grid = (pl.cdiv(B, tm),)

    out = pl.pallas_call(
        net_kernel,
        out_shape=jax.ShapeDtypeStruct((B, PAD_OUT), jnp.bfloat16),
        grid=grid,
        in_specs=[
            # NOTE: if profiling on v7x shows exposed DMA at step boundaries,
            # add pipeline_mode=pl.Buffered(3) to this x spec.
            pl.BlockSpec((tm, IN_DIM), lambda i: (i, 0)),          # x tile (f32)
            pl.BlockSpec((IN_DIM, HID_DIM), lambda i: (0, 0)),     # w1 bf16 (resident)
            pl.BlockSpec((1, HID_DIM), lambda i: (0, 0)),          # b1 f32
            pl.BlockSpec((HID_DIM, PAD_OUT), lambda i: (0, 0)),    # w2 bf16 (resident)
            pl.BlockSpec((1, PAD_OUT), lambda i: (0, 0)),          # b2 f32 (padded)
        ],
        out_specs=pl.BlockSpec((tm, PAD_OUT), lambda i: (i, 0)),   # lane-dense out
        compiler_params=pltpu.CompilerParams(
            dimension_semantics=("parallel",),
            vmem_limit_bytes=_vmem_limit_bytes(tm),
        ),
    )(x, w1_q, b1_p, w2_q, b2_p)

    return out[:, :OUT_DIM].astype(jnp.float32)


def reference_forward(x, w1, b1, w2, b2):
    """Pure-JAX f32 reference with the module's semantics (sanity check)."""
    def fake_quant(w):
        amax = jnp.max(jnp.abs(w))
        s = jnp.where(amax > 0, amax / 127.0, 1.0)
        return jnp.round(w / s) * s

    h = jnp.maximum(x @ fake_quant(w1) + b1, 0.0)
    z = h @ fake_quant(w2) + b2
    return jax.nn.log_softmax(z, axis=1)


if __name__ == "__main__":
    key = jax.random.PRNGKey(0)
    k_x, k_w1, k_b1, k_w2, k_b2 = jax.random.split(key, 5)

    B = 8
    x = jax.random.normal(k_x, (B, IN_DIM), dtype=jnp.float32)

    # Deterministic parameter init (uniform, roughly Kaiming-style bounds).
    bound1 = 1.0 / (IN_DIM ** 0.5)
    bound2 = 1.0 / (HID_DIM ** 0.5)
    w1 = jax.random.uniform(k_w1, (IN_DIM, HID_DIM), jnp.float32, -bound1, bound1)
    b1 = jax.random.uniform(k_b1, (HID_DIM,), jnp.float32, -bound1, bound1)
    w2 = jax.random.uniform(k_w2, (HID_DIM, OUT_DIM), jnp.float32, -bound2, bound2)
    b2 = jax.random.uniform(k_b2, (OUT_DIM,), jnp.float32, -bound2, bound2)

    out = jax.block_until_ready(net_custom_quant(x, w1, b1, w2, b2))
    ref = reference_forward(x, w1, b1, w2, b2)

    assert out.shape == (B, OUT_DIM)
    # log_softmax rows should sum (in prob space) to ~1 (bf16 writeback slack)
    assert jnp.allclose(jnp.exp(out).sum(axis=1), 1.0, atol=1e-2)
    # bf16 MXU inputs + bf16 output vs the f32 reference: mixed-precision gap
    assert jnp.allclose(out, ref, atol=3e-2, rtol=3e-2), "mismatch vs reference"

    print("KERNEL_OK")
</pallas_src>

<mosaic_0001>
module attributes {stable_mosaic.version = 11 : i64} {
  func.func @net_kernel(%arg0: i32, %arg1: memref<8x784xf32, #tpu.memory_space<vmem>>, %arg2: memref<784x128xbf16, #tpu.memory_space<vmem>>, %arg3: memref<1x128xf32, #tpu.memory_space<vmem>>, %arg4: memref<128x128xbf16, #tpu.memory_space<vmem>>, %arg5: memref<1x128xf32, #tpu.memory_space<vmem>>, %arg6: memref<8x128xbf16, #tpu.memory_space<vmem>>) attributes {dimension_semantics = [#tpu.dimension_semantics<parallel>], iteration_bounds = array<i64: 1>, scalar_prefetch = 0 : i64, scratch_operands = 0 : i64, tpu.core_type = #tpu.core_type<tc>, window_params = [{transform_indices = @transform_0, window_bounds = array<i64: 8, 784>}, {pipeline_mode = #tpu.pipeline_mode<synchronous>, transform_indices = @transform_1, window_bounds = array<i64: 784, 128>}, {pipeline_mode = #tpu.pipeline_mode<synchronous>, transform_indices = @transform_2, window_bounds = array<i64: 1, 128>}, {pipeline_mode = #tpu.pipeline_mode<synchronous>, transform_indices = @transform_3, window_bounds = array<i64: 128, 128>}, {pipeline_mode = #tpu.pipeline_mode<synchronous>, transform_indices = @transform_4, window_bounds = array<i64: 1, 128>}, {transform_indices = @transform_5, window_bounds = array<i64: 8, 128>}]} {
    %c0 = arith.constant 0 : index
    %c0_0 = arith.constant 0 : index
    %0 = vector.load %arg1[%c0, %c0_0] : memref<8x784xf32, #tpu.memory_space<vmem>>, vector<8x784xf32>
    %1 = arith.truncf %0 : vector<8x784xf32> to vector<8x784xbf16>
    %c0_1 = arith.constant 0 : index
    %c0_2 = arith.constant 0 : index
    %2 = vector.load %arg2[%c0_1, %c0_2] : memref<784x128xbf16, #tpu.memory_space<vmem>>, vector<784x128xbf16>
    %cst = arith.constant dense<0.000000e+00> : vector<8x128xf32>
    %3 = tpu.matmul %1, %2, %cst {dimension_numbers = #tpu.dot_dimension_numbers<[1], [0], [0], [1], [0, 0, 1, 1], [], []>} : vector<8x784xbf16>, vector<784x128xbf16>, vector<8x128xf32> -> vector<8x128xf32>
    %c0_3 = arith.constant 0 : index
    %c0_4 = arith.constant 0 : index
    %4 = vector.load %arg3[%c0_3, %c0_4] : memref<1x128xf32, #tpu.memory_space<vmem>>, vector<1x128xf32>
    %5 = vector.broadcast %4 : vector<1x128xf32> to vector<8x128xf32>
    %6 = arith.addf %3, %5 : vector<8x128xf32>
    %cst_5 = arith.constant 0.000000e+00 : f32
    %7 = vector.broadcast %cst_5 : f32 to vector<8x128xf32>
    %8 = arith.maximumf %6, %7 : vector<8x128xf32>
    %9 = arith.truncf %8 : vector<8x128xf32> to vector<8x128xbf16>
    %c0_6 = arith.constant 0 : index
    %c0_7 = arith.constant 0 : index
    %10 = vector.load %arg4[%c0_6, %c0_7] : memref<128x128xbf16, #tpu.memory_space<vmem>>, vector<128x128xbf16>
    %cst_8 = arith.constant dense<0.000000e+00> : vector<8x128xf32>
    %11 = tpu.matmul %9, %10, %cst_8 {dimension_numbers = #tpu.dot_dimension_numbers<[1], [0], [0], [1], [0, 0, 1, 1], [], []>} : vector<8x128xbf16>, vector<128x128xbf16>, vector<8x128xf32> -> vector<8x128xf32>
    %c0_9 = arith.constant 0 : index
    %c0_10 = arith.constant 0 : index
    %12 = vector.load %arg5[%c0_9, %c0_10] : memref<1x128xf32, #tpu.memory_space<vmem>>, vector<1x128xf32>
    %13 = vector.broadcast %12 : vector<1x128xf32> to vector<8x128xf32>
    %14 = arith.addf %11, %13 : vector<8x128xf32>
    %cst_11 = arith.constant dense<0xFF800000> : vector<8xf32>
    %15 = vector.multi_reduction <maximumf>, %14, %cst_11 [1] : vector<8x128xf32> to vector<8xf32>
    %16 = vector.shape_cast %15 : vector<8xf32> to vector<8x1xf32>
    %17 = vector.broadcast %16 : vector<8x1xf32> to vector<8x128xf32>
    %18 = arith.subf %14, %17 : vector<8x128xf32>
    %19 = math.exp %18 : vector<8x128xf32>
    %cst_12 = arith.constant dense<0.000000e+00> : vector<8xf32>
    %20 = vector.multi_reduction <add>, %19, %cst_12 [1] : vector<8x128xf32> to vector<8xf32>
    %21 = vector.shape_cast %20 : vector<8xf32> to vector<8x1xf32>
    %22 = math.log %21 : vector<8x1xf32>
    %23 = arith.addf %16, %22 : vector<8x1xf32>
    %24 = vector.broadcast %23 : vector<8x1xf32> to vector<8x128xf32>
    %25 = arith.subf %14, %24 : vector<8x128xf32>
    %26 = arith.truncf %25 : vector<8x128xf32> to vector<8x128xbf16>
    %c0_13 = arith.constant 0 : index
    %c0_14 = arith.constant 0 : index
    %27 = vector.load %arg6[%c0_13, %c0_14] : memref<8x128xbf16, #tpu.memory_space<vmem>>, vector<8x128xbf16>
    tpu.vector_store %arg6[%c0_13, %c0_14], %26 {strides = array<i32>} : memref<8x128xbf16, #tpu.memory_space<vmem>>, vector<8x128xbf16>,
    return
  }
  func.func @transform_0(%arg0: i32) -> (i32, i32) {
    %c0_i32 = arith.constant 0 : i32
    %c0_i32_0 = arith.constant 0 : i32
    return %arg0, %c0_i32 : i32, i32
  }
  func.func @transform_1(%arg0: i32) -> (i32, i32) {
    %c0_i32 = arith.constant 0 : i32
    %c0_i32_0 = arith.constant 0 : i32
    %c0_i32_1 = arith.constant 0 : i32
    return %c0_i32, %c0_i32_0 : i32, i32
  }
  func.func @transform_2(%arg0: i32) -> (i32, i32) {
    %c0_i32 = arith.constant 0 : i32
    %c0_i32_0 = arith.constant 0 : i32
    %c0_i32_1 = arith.constant 0 : i32
    return %c0_i32, %c0_i32_0 : i32, i32
  }
  func.func @transform_3(%arg0: i32) -> (i32, i32) {
    %c0_i32 = arith.constant 0 : i32
    %c0_i32_0 = arith.constant 0 : i32
    %c0_i32_1 = arith.constant 0 : i32
    return %c0_i32, %c0_i32_0 : i32, i32
  }
  func.func @transform_4(%arg0: i32) -> (i32, i32) {
    %c0_i32 = arith.constant 0 : i32
    %c0_i32_0 = arith.constant 0 : i32
    %c0_i32_1 = arith.constant 0 : i32
    return %c0_i32, %c0_i32_0 : i32, i32
  }
  func.func @transform_5(%arg0: i32) -> (i32, i32) {
    %c0_i32 = arith.constant 0 : i32
    %c0_i32_0 = arith.constant 0 : i32
    return %arg0, %c0_i32 : i32, i32
  }
}

</mosaic_0001>

<bundles_post_ra>
// kernel: tpu_custom_call.1
= control target key start
LH: loop header
LB: loop body
LE: loop exit
PB: predicated region body
PF: predicated region fallthrough
CT: control target
= control target key end

     0   :  { %10 = vsyncpa [#allocation3], 0  ;;  %s1217_s0 = inlined_call_operand.hbm [shape: f32[8,784], index: 0, kind: input, shape index: {}]   ;;  %s1218_s1 = inlined_call_operand.hbm [shape: bf16[784,128], index: 1, kind: input, shape index: {}]   ;;  %s1219_s2 = inlined_call_operand.vmem [shape: f32[1,128], index: 2, kind: input, shape index: {}]   ;;  %s1220_s3 = inlined_call_operand.hbm [shape: bf16[128,128], index: 3, kind: input, shape index: {}]   ;;  %s1221_s4 = inlined_call_operand.vmem [shape: f32[1,128], index: 4, kind: input, shape index: {}]   ;;  %s1222_s5 = inlined_call_operand.hbm [shape: bf16[8,128], index: 5, kind: output, shape index: {}]  }
   0x1   :  { %11 = vsyncpa [#allocation6], 0 }
   0x2   :  { %12 = vsyncpa [#allocation4], 0  ;;  %s1106_s18 = smov [#allocation5]   ;;  %s1012_s22 = scalar_lea.hbm %s1218_s1, 6272 }
   0x3   :  { %s28_s19 = sshll.u32 %s1106_s18, 4  ;;  %p1013_p0 = scmp.ne.s32.totalorder %s1218_s1, %s1012_s22  ;;  %s29_s19 = int_to_ptr.vmem [resolvable:$true] %s28_s19 }
   0x4   :  { %p1016_p1 = scmp.lt.u32.totalorder %s1012_s22, %s1218_s1 }
   0x6   :  { %p1018_p2 = pnand %p1016_p1, %p1013_p0 }
   0x8   :  { %1021 = shalt.err (!%p1018_p2)
}
   0x9   :  { %s1022_s27 = scalar_lea.vmem %s29_s19, 6272  ;;  %p1027_p4 = scmp.lt.s32.totalorder %s29_s19, %s29_s19 }
   0xa   :  { %p1023_p3 = scmp.ne.s32.totalorder %s29_s19, %s1022_s27  ;;  %p1028_p5 = scmp.lt.s32.totalorder %s1022_s27, %s1022_s27 }
   0xc   :  { %p1029_p6 = por %p1028_p5, %p1027_p4 }
   0xe   :  { %p1030_p7 = pnand %p1029_p6, %p1023_p3 }
  0x10   :  { %1033 = shalt.err (!%p1030_p7)
}
  0x11   :  { %s1107_s28 = smov 64   ;;  %s1108_s29 = smov 4  }
  0x12   :  { %34 = dma.hbm_to_vmem [thread:$0]  %s1218_s1, 6272, %s29_s19, [#allocation6], %s1107_s28, %s1107_s28, %s1108_s29  }
  0x13   :  { %s1109_s7 = smov [#allocation2]   ;;  %s1110_s9 = smov [#allocation7]  }
  0x14   :  { %s19_s8 = sshll.u32 %s1109_s7, 4  ;;  %s42_s10 = sshll.u32 %s1110_s9, 4  ;;  %s20_s8 = int_to_ptr.vmem [resolvable:$true] %s19_s8  ;;  %s43_s10 = int_to_ptr.vmem [resolvable:$true] %s42_s10 }
  0x15   :  { %s1034_s13 = scalar_lea.hbm %s1217_s0, 896 }
  0x16   :  { %p1035_p8 = scmp.ne.s32.totalorder %s1217_s0, %s1034_s13  ;;  %p1038_p9 = scmp.lt.u32.totalorder %s1034_s13, %s1217_s0 }
  0x18   :  { %p1040_p10 = pnand %p1038_p9, %p1035_p8 }
  0x1a   :  { %1043 = shalt.err (!%p1040_p10)
}
  0x1b   :  { %s1044_s1 = scalar_lea.vmem %s20_s8, 896  ;;  %p1049_p12 = scmp.lt.s32.totalorder %s20_s8, %s20_s8 }
  0x1c   :  { %p1045_p11 = scmp.ne.s32.totalorder %s20_s8, %s1044_s1  ;;  %p1050_p13 = scmp.lt.s32.totalorder %s1044_s1, %s1044_s1 }
  0x1e   :  { %p1051_p0 = por %p1050_p13, %p1049_p12 }
  0x20   :  { %p1052_p1 = pnand %p1051_p0, %p1045_p11 }
  0x22   :  { %1055 = shalt.err (!%p1052_p1)
}
  0x23   :  { %22 = dma.hbm_to_vmem [thread:$0]  %s1217_s0, 896, %s20_s8, [#allocation3]  }
  0x24   :  { %s1056_s22 = scalar_lea.hbm %s1220_s3, 1024 }
  0x25   :  { %p1057_p2 = scmp.ne.s32.totalorder %s1220_s3, %s1056_s22  ;;  %p1060_p3 = scmp.lt.u32.totalorder %s1056_s22, %s1220_s3 }
  0x27   :  { %p1062_p4 = pnand %p1060_p3, %p1057_p2 }
  0x29   :  { %1065 = shalt.err (!%p1062_p4)
}
  0x2a   :  { %s1066_s27 = scalar_lea.vmem %s43_s10, 1024  ;;  %p1071_p6 = scmp.lt.s32.totalorder %s43_s10, %s43_s10 }
  0x2b   :  { %p1067_p5 = scmp.ne.s32.totalorder %s43_s10, %s1066_s27  ;;  %p1072_p7 = scmp.lt.s32.totalorder %s1066_s27, %s1066_s27 }
  0x2d   :  { %p1073_p8 = por %p1072_p7, %p1071_p6 }
  0x2f   :  { %p1074_p9 = pnand %p1073_p8, %p1067_p5 }
  0x31   :  { %1077 = shalt.err (!%p1074_p9)
}
  0x32   :  { %48 = dma.hbm_to_vmem [thread:$0]  %s1220_s3, 1024, %s43_s10, [#allocation6], %s1107_s28, %s1107_s28, %s1108_s29  }
  0x33   :  { %1100 = dma.done.wait [#allocation3], 896  }
  0x34   :  { %1101 = vsyncadd [#allocation3], 4294966400 }
  0x35   :  { %1102 = dma.done.wait [#allocation6], 7296  }
  0x36   :  { %1103 = vsyncadd [#allocation6], 4294960000  ;;  %v951_v0 = vld [vmem:[#allocation5 + $0x40] sm:$0xff]   ;;  %v955_v4 = vld [vmem:[#allocation5 + $0x48] sm:$0xff]   ;;  %v1111_v44 = vmov 0.0   ;;  %vm1112_vm0 = vmmov 0  }
  0x37   :  { %v952_v1 = vld [vmem:[#allocation5] sm:$0xff]   ;;  %840 = vmatprep.subr.bf16.mxu0 %v951_v0  ;;  %v956_v5 = vld [vmem:[#allocation5 + $0x8] sm:$0xff]   ;;  %v959_v8 = vld [vmem:[#allocation5 + $0x50] sm:$0xff]   ;;  %vm474_vm1 = vcmask 130048   ;;  %s1113_s6 = smov [#allocation8]  }
  0x38   :  { %v953_v2 = vld [vmem:[#allocation5 + $0xc0] sm:$0xff]   ;;  %841 = vmatpush3.bf16.msra.mxu0 %v952_v1  ;;  %v957_v6 = vld [vmem:[#allocation5 + $0xc8] sm:$0xff]   ;;  %v960_v9 = vld [vmem:[#allocation5 + $0x10] sm:$0xff]   ;;  %s770_s7 = sshll.u32 %s1113_s6, 4  ;;  %s771_s7 = int_to_ptr.vmem [resolvable:$true] %s770_s7 }
  0x39   :  { %v954_v3 = vld [vmem:[#allocation5 + $0x80] sm:$0xff]   ;;  %862 = vmatprep.subr.bf16.mxu1 %v953_v2  ;;  %842 = vmatprep.subr.bf16.mxu0 %v955_v4  ;;  %v958_v7 = vld [vmem:[#allocation5 + $0x88] sm:$0xff]   ;;  %v961_v10 = vld [vmem:[#allocation5 + $0xd0] sm:$0xff]   ;;  %p1083_p11 = scmp.lt.s32.totalorder %s771_s7, %s771_s7 }
  0x3a   :  { %863 = vmatpush3.bf16.msra.mxu1 %v954_v3  ;;  %v962_v11 = vld [vmem:[#allocation5 + $0x90] sm:$0xff]   ;;  %v963_v12 = vld [vmem:[#allocation5 + $0x58] sm:$0xff]   ;;  %v967_v16 = vld [vmem:[#allocation5 + $0x60] sm:$0xff]  }
  0x3b   :  { %864 = vmatprep.subr.bf16.mxu1 %v957_v6  ;;  %v964_v13 = vld [vmem:[#allocation5 + $0x18] sm:$0xff]   ;;  %v968_v17 = vld [vmem:[#allocation5 + $0x20] sm:$0xff]   ;;  %v971_v20 = vld [vmem:[#allocation5 + $0x68] sm:$0xff]  }
  0x3c   :  { %843 = vmatpush3.bf16.msra.mxu0 %v956_v5  ;;  %v965_v14 = vld [vmem:[#allocation5 + $0xd8] sm:$0xff]   ;;  %v969_v18 = vld [vmem:[#allocation5 + $0xe0] sm:$0xff]   ;;  %v972_v21 = vld [vmem:[#allocation5 + $0x28] sm:$0xff]  }
  0x3d   :  { %844 = vmatprep.subr.bf16.mxu0 %v959_v8  ;;  %v966_v15 = vld [vmem:[#allocation5 + $0x98] sm:$0xff]   ;;  %v970_v19 = vld [vmem:[#allocation5 + $0xa0] sm:$0xff]   ;;  %v973_v22 = vld [vmem:[#allocation5 + $0xe8] sm:$0xff]  }
  0x3e   :  { %865 = vmatpush3.bf16.msra.mxu1 %v958_v7  ;;  %v974_v23 = vld [vmem:[#allocation5 + $0xa8] sm:$0xff]   ;;  %v975_v24 = vld [vmem:[#allocation5 + $0x70] sm:$0xff]   ;;  %v979_v28 = vld [vmem:[#allocation5 + $0x78] sm:$0xff]  }
  0x3f   :  { %866 = vmatprep.subr.bf16.mxu1 %v961_v10  ;;  %v976_v25 = vld [vmem:[#allocation5 + $0x30] sm:$0xff]   ;;  %v980_v29 = vld [vmem:[#allocation5 + $0x38] sm:$0xff]   ;;  %v61_v34 = vld [vmem:[#allocation2] sm:$0xff] }
  0x40   :  { %845 = vmatpush3.bf16.msra.mxu0 %v960_v9  ;;  %v977_v26 = vld [vmem:[#allocation5 + $0xf0] sm:$0xff]   ;;  %v981_v30 = vld [vmem:[#allocation5 + $0xf8] sm:$0xff]   ;;  %v68_v35 = vpack.c.bf16 %v61_v34, %v61_v34  ;;  %v983_v36 = vld [vmem:[#allocation5 + $0x140] sm:$0xff]  }
  0x41   :  { %846 = vmatprep.subr.bf16.mxu0 %v963_v12  ;;  %v978_v27 = vld [vmem:[#allocation5 + $0xb0] sm:$0xff]   ;;  %v982_v33 = vld [vmem:[#allocation5 + $0xb8] sm:$0xff]   ;;  %v64_v37 = vld [vmem:[#allocation2 + $0x18] sm:$0xff] }
  0x42   :  { %867 = vmatpush3.bf16.msra.mxu1 %v962_v11  ;;  %v62_v31 = vld [vmem:[#allocation2 + $0x8] sm:$0xff]  ;;  %v71_v38 = vpack.c.bf16 %v64_v37, %v64_v37  ;;  %v984_v39 = vld [vmem:[#allocation5 + $0x100] sm:$0xff]   ;;  %v63_v40 = vld [vmem:[#allocation2 + $0x10] sm:$0xff] }
  0x43   :  { %868 = vmatprep.subr.bf16.mxu1 %v965_v14  ;;  %v69_v32 = vpack.c.bf16 %v62_v31, %v62_v31  ;;  %v70_v41 = vpack.c.bf16 %v63_v40, %v63_v40  ;;  %v985_v42 = vld [vmem:[#allocation5 + $0x148] sm:$0xff]   ;;  %v987_v45 = vld [vmem:[#allocation5 + $0x150] sm:$0xff]   ;;  %v989_v47 = vld [vmem:[#allocation5 + $0x158] sm:$0xff]  }
  0x44   :  { %847 = vmatpush3.bf16.msra.mxu0 %v964_v13  ;;  %550 = vmatprep.mubr.bf16.mxu1 %v71_v38  ;;  %v986_v43 = vld [vmem:[#allocation5 + $0x108] sm:$0xff]   ;;  %v988_v46 = vld [vmem:[#allocation5 + $0x110] sm:$0xff]   ;;  %v990_v48 = vld [vmem:[#allocation5 + $0x118] sm:$0xff]  }
  0x45   :  { %848 = vmatprep.subr.bf16.mxu0 %v967_v16  ;;  %510 = vmatprep.mubr.bf16.mxu0 %v69_v32  ;;  %v991_v49 = vld [vmem:[#allocation5 + $0x160] sm:$0xff]   ;;  %v993_v51 = vld [vmem:[#allocation5 + $0x168] sm:$0xff]   ;;  %v66_v54 = vld [vmem:[#allocation2 + $0x28] sm:$0xff] }
  0x46   :  { %869 = vmatpush3.bf16.msra.mxu1 %v966_v15  ;;  %v992_v50 = vld [vmem:[#allocation5 + $0x120] sm:$0xff]   ;;  %v994_v52 = vld [vmem:[#allocation5 + $0x128] sm:$0xff]   ;;  %v995_v55 = vld [vmem:[#allocation5 + $0x170] sm:$0xff]   ;;  %v73_v56 = vpack.c.bf16 %v66_v54, %v66_v54 }
  0x47   :  { %870 = vmatprep.subr.bf16.mxu1 %v969_v18  ;;  %v999_v53 = vld [vmem:[#allocation5 + $0x180] sm:$0xff]   ;;  %v67_v57 = vld [vmem:[#allocation2 + $0x30] sm:$0xff]  ;;  %v996_v59 = vld [vmem:[#allocation5 + $0x130] sm:$0xff]  }
  0x48   :  { %849 = vmatpush3.bf16.msra.mxu0 %v968_v17  ;;  %v74_v58 = vpack.c.bf16 %v67_v57, %v67_v57  ;;  %v997_v60 = vld [vmem:[#allocation5 + $0x178] sm:$0xff]   ;;  %v65_v62 = vld [vmem:[#allocation2 + $0x20] sm:$0xff]  ;;  %v1001_v1 = vld [vmem:[#allocation7 + $0x8] sm:$0xff]  }
  0x49   :  { %850 = vmatprep.subr.bf16.mxu0 %v971_v20  ;;  %v998_v61 = vld [vmem:[#allocation5 + $0x138] sm:$0xff]   ;;  %v72_v63 = vpack.c.bf16 %v65_v62, %v65_v62  ;;  %v1000_v0 = vld [vmem:[#allocation7] sm:$0xff]   ;;  %v1003_v3 = vld [vmem:[#allocation7 + $0x18] sm:$0xff]  }
  0x4a   :  { %871 = vmatpush3.bf16.msra.mxu1 %v970_v19  ;;  %v1002_v2 = vld [vmem:[#allocation7 + $0x10] sm:$0xff]   ;;  %v1004_v4 = vld [vmem:[#allocation7 + $0x20] sm:$0xff]   ;;  %v1005_v5 = vld [vmem:[#allocation7 + $0x28] sm:$0xff]  }
  0x4b   :  { %872 = vmatprep.subr.bf16.mxu1 %v973_v22  ;;  %v1006_v6 = vld [vmem:[#allocation7 + $0x30] sm:$0xff]   ;;  %v1007_v7 = vld [vmem:[#allocation7 + $0x38] sm:$0xff]   ;;  %v780_v9 = vld [vmem:[%s1219_s2] ss:$0 sm:$0xff] }
  0x4c   :  { %851 = vmatpush3.bf16.msra.mxu0 %v972_v21  ;;  %v831_v34 = vld [vmem:[%s1221_s4] ss:$0 sm:$0xff]  ;;  %s1078_s4 = scalar_lea.vmem %s771_s7, 64 }
  0x4d   :  { %852 = vmatprep.subr.bf16.mxu0 %v975_v24  ;;  %p1079_p10 = scmp.ne.s32.totalorder %s771_s7, %s1078_s4  ;;  %p1084_p12 = scmp.lt.s32.totalorder %s1078_s4, %s1078_s4 }
  0x4e   :  { %873 = vmatpush3.bf16.msra.mxu1 %v974_v23 }
  0x4f   :  { %874 = vmatprep.subr.bf16.mxu1 %v977_v26  ;;  %p1085_p13 = por %p1084_p12, %p1083_p11 }
  0x50   :  { %853 = vmatpush3.bf16.msra.mxu0 %v976_v25 }
  0x51   :  { %854 = vmatprep.subr.bf16.mxu0 %v979_v28  ;;  %p1086_p0 = pnand %p1085_p13, %p1079_p10 }
  0x52   :  { %875 = vmatpush3.bf16.msra.mxu1 %v978_v27 }
  0x53   :  { %876 = vmatprep.subr.bf16.mxu1 %v981_v30 }
  0x54   :  { %855 = vmatpush3.bf16.msra.mxu0 %v980_v29 }
  0x55   :  { %884 = vmatprep.subr.bf16.mxu0 %v983_v36 }
  0x56   :  { %877 = vmatpush3.bf16.msra.mxu1 %v982_v33 }
  0x57   :  { %511 = vmatmul.mubr.bf16.vlgmr.msra.gmra.mrb[0].mxu0 %v68_v35  ;;  %917 = vmatprep.subr.bf16.mxu1 %v1111_v44 }
  0x58   :  { %885 = vmatpush3.bf16.msra.mxu0 %v984_v39  ;;  %590 = vmatprep.mubr.bf16.mxu0 %v73_v56 }
  0x59   :  { %551 = vmatmul.mubr.bf16.vlgmr.msra.gmra.mrb[0].mxu1 %v70_v41  ;;  %886 = vmatprep.subr.bf16.mxu0 %v985_v42 }
  0x5a   :  { %919 = vmatprep.mubr.msk.bf16.mxu1 %vm1112_vm0, %v1111_v44  ;;  %918 = vmatpush3.bf16.msra.mxu1 %v999_v53 }
  0x5b   :  { %923 = vmatprep.subr.bf16.mxu1 %v1111_v44 }
  0x5c   :  { %887 = vmatpush3.bf16.msra.mxu0 %v986_v43 }
  0x5d   :  { %888 = vmatprep.subr.bf16.mxu0 %v987_v45 }
  0x60   :  { %889 = vmatpush3.bf16.msra.mxu0 %v988_v46 }
  0x61   :  { %890 = vmatprep.subr.bf16.mxu0 %v989_v47  ;;  %920 = vmatmul.mubr.msk.bf16.vlgmr.msra.gmra.mrb[4].mxu1 %vm474_vm1, %v74_v58 }
  0x62   :  { %939 = vmatprep.mubr.msk.bf16.mxu1 %vm1112_vm0, %v1111_v44  ;;  %924 = vmatpush3.bf16.msra.mxu1 %v1000_v0 }
  0x63   :  { %925 = vmatprep.subr.bf16.mxu1 %v1111_v44 }
  0x64   :  { %891 = vmatpush3.bf16.msra.mxu0 %v990_v48 }
  0x65   :  { %892 = vmatprep.subr.bf16.mxu0 %v991_v49 }
  0x66   :  { %926 = vmatpush3.bf16.msra.mxu1 %v1001_v1 }
  0x67   :  { %927 = vmatprep.subr.bf16.mxu1 %v1111_v44 }
  0x68   :  { %893 = vmatpush3.bf16.msra.mxu0 %v992_v50 }
  0x69   :  { %894 = vmatprep.subr.bf16.mxu0 %v993_v51 }
  0x6a   :  { %928 = vmatpush3.bf16.msra.mxu1 %v1002_v2 }
  0x6b   :  { %929 = vmatprep.subr.bf16.mxu1 %v1111_v44 }
  0x6c   :  { %895 = vmatpush3.bf16.msra.mxu0 %v994_v52 }
  0x6d   :  { %896 = vmatprep.subr.bf16.mxu0 %v995_v55 }
  0x6e   :  { %930 = vmatpush3.bf16.msra.mxu1 %v1003_v3 }
  0x6f   :  { %931 = vmatprep.subr.bf16.mxu1 %v1111_v44 }
  0x70   :  { %897 = vmatpush3.bf16.msra.mxu0 %v996_v59 }
  0x71   :  { %898 = vmatprep.subr.bf16.mxu0 %v997_v60 }
  0x72   :  { %932 = vmatpush3.bf16.msra.mxu1 %v1004_v4 }
  0x73   :  { %933 = vmatprep.subr.bf16.mxu1 %v1111_v44 }
  0x74   :  { %899 = vmatpush3.bf16.msra.mxu0 %v998_v61 }
  0x76   :  { %934 = vmatpush3.bf16.msra.mxu1 %v1005_v5 }
  0x77   :  { %591 = vmatmul.mubr.bf16.vlgmr.msra.gmra.mrb[4].mxu0 %v72_v63  ;;  %935 = vmatprep.subr.bf16.mxu1 %v1111_v44 }
  0x7a   :  { %936 = vmatpush3.bf16.msra.mxu1 %v1006_v6 }
  0x7b   :  { %937 = vmatprep.subr.bf16.mxu1 %v1111_v44 }
  0x7e   :  { %938 = vmatpush3.bf16.msra.mxu1 %v1007_v7 }
 0x12a   :  { %v856_v8 = vpop.f32.mrb[0].mxu0 }
 0x12b   :  { %v857_v10 = vpop.f32.mrb[1].mxu0 }
 0x12c   :  { %v858_v11 = vadd.f32 %v857_v10, %v856_v8  ;;  %v859_v12 = vpop.f32.mrb[2].mxu0  ;;  %v878_v13 = vpop.f32.mrb[0].mxu1 }
 0x12d   :  { %v860_v14 = vpop.f32.mrb[3].mxu0  ;;  %v879_v16 = vpop.f32.mrb[1].mxu1 }
 0x12e   :  { %v513_v15 = vadd.f32 %v858_v11, %v780_v9  ;;  %v880_v17 = vadd.f32 %v879_v16, %v878_v13  ;;  %v881_v18 = vpop.f32.mrb[2].mxu1 }
 0x12f   :  { %v882_v19 = vpop.f32.mrb[3].mxu1 }
 0x130   :  { %v553_v20 = vadd.f32 %v880_v17, %v513_v15 }
 0x134   :  { %v632_v21 = vpop.f32.mrb[4].mxu1 }
 0x135   :  { %v921_v22 = vpop.f32.mrb[5].mxu1 }
 0x136   :  { %v635_v23 = vpop.f32.mrb[6].mxu1 }
 0x137   :  { %v922_v24 = vpop.f32.mrb[7].mxu1 }
 0x14a   :  { %v900_v25 = vpop.f32.mrb[4].mxu0 }
 0x14b   :  { %v901_v26 = vpop.f32.mrb[5].mxu0 }
 0x14c   :  { %v902_v27 = vadd.f32 %v901_v26, %v900_v25  ;;  %v903_v28 = vpop.f32.mrb[6].mxu0 }
 0x14d   :  { %v904_v29 = vpop.f32.mrb[7].mxu0 }
 0x14e   :  { %v593_v30 = vadd.f32 %v902_v27, %v553_v20 }
 0x150   :  { %v633_v31 = vadd.f32 %v632_v21, %v593_v30 }
 0x152   :  { %v638_v32 = vmax.f32 %v633_v31, 0.0 }
 0x154   :  { %v639_v33 = vpack.c.bf16 %v638_v32, %v638_v32 }
 0x156   :  { %940 = vmatmul.mubr.bf16.vlgmr.msra.gmra.mrb[8].mxu1 %v639_v33 }
 0x229   :  { %v745_v35 = vpop.f32.mrb[8].mxu1 }
 0x22a   :  { %v746_v36 = vadd.f32 %v831_v34, %v745_v35  ;;  %v941_v37 = vpop.f32.mrb[9].mxu1 }
 0x22b   :  { %v748_v38 = vpop.f32.mrb[10].mxu1 }
 0x22c   :  { %751 = vmax.xlane.f32.xlu0 %v746_v36  ;;  %v942_v39 = vpop.f32.mrb[11].mxu1 }
 0x2b9   :  { %v752_v40 = vpop.xlane.xlu0 %751 }
 0x2ba   :  { %v753_v41 = vsub.f32 %v746_v36, %v752_v40 }
 0x2bc   :  { %v754_v42 = vmul.f32 1.442695, %v753_v41 }
 0x2be   :  { %1008 = vpow2.f32 %v754_v42 }
 0x2c8   :  { %v1009_v43 = vpop.eup %1008 }
 0x2c9   :  { %756 = vadd.xlane.f32.xlu0 %v1009_v43 }
 0x356   :  { %v757_v44 = vpop.xlane.xlu0 %756 }
 0x357   :  { %1010 = vlog2.f32 %v757_v44 }
 0x361   :  { %v1011_v45 = vpop.eup %1010 }
 0x362   :  { %v759_v46 = vmul.f32 0.6931472, %v1011_v45 }
 0x364   :  { %v760_v47 = vadd.f32 %v759_v46, %v752_v40 }
 0x366   :  { %v761_v48 = vsub.f32 %v746_v36, %v760_v47 }
 0x368   :  { %v762_v49 = vpack.c.bf16 %v761_v48, %v761_v48 }
 0x36a   :  { %763 = vst [vmem:[#allocation8] sm:$0xf] %v762_v49 }
 0x36b   :  { %1089 = shalt.err (!%p1086_p0)
}
 0x36c   :  { %s1090_s10 = scalar_lea.hbm %s1222_s5, 64 }
 0x36d   :  { %p1091_p1 = scmp.ne.s32.totalorder %s1222_s5, %s1090_s10  ;;  %p1094_p2 = scmp.lt.u32.totalorder %s1090_s10, %s1222_s5 }
 0x36f   :  { %p1096_p3 = pnand %p1094_p2, %p1091_p1 }
 0x371   :  { %1099 = shalt.err (!%p1096_p3)
}
 0x372   :  { %773 = dma.vmem_to_hbm [thread:$0]  %s771_s7, 64, %s1222_s5, [#allocation4]  }
 0x373   :  { %1104 = dma.done.wait [#allocation4], 64  }
 0x374   :  { %1105 = vsyncadd [#allocation4], 4294967232 }
 0x375   :  { %777 = vsyncpa [#allocation3], 1 }
 0x376   :  { %778 = vsyncpa [#allocation6], 1 }
 0x377   :  { %779 = vsyncpa [#allocation4], 1 }

</bundles_post_ra>
